<compile_context>
chip_gen: v7x
topology: tpu7x:2x2x1
jax: 0.10.0
libtpu: 0.0.40
codegen_flags: <defaults>
</compile_context>

<pallas_src>
import functools

import jax
import jax.numpy as jnp
from jax.experimental import pallas as pl
from jax.experimental.pallas import tpu as pltpu


def _mlp_kernel(x_ref, w1_ref, b1_ref, w2_ref, b2_ref, o_ref):
    # x_ref : (TB, F) f32   raw batch-major activation tile (single-pass HBM read)
    # w1_ref: (H, F)  bf16  L1 weight, PyTorch (out, in) layout (grid-resident)
    # b1_ref: (H, 1)  f32
    # w2_ref: (H, 1)  f32   L2 weight as a column
    # b2_ref: (1, 1)  f32   scalar in SMEM
    # o_ref : (1, TB) f32   lane-dense output row
    xb = x_ref[...].astype(jnp.bfloat16)                     # cast for the MXU (VPU)
    # (H, F) @ (F, TB) -> (H, TB): hidden activation lane-dense on the batch axis.
    h = jnp.dot(w1_ref[...], xb.T, preferred_element_type=jnp.float32)
    h = jnp.maximum(h + b1_ref[...], 0.0)                    # bias + ReLU, full-lane vregs
    # Layer 2 (N=1): VPU multiply + XLU sublane reduce -- keeps the MXU out of it.
    y = jnp.sum(h * w2_ref[...], axis=0, keepdims=True) + b2_ref[0, 0]   # (1, TB)
    # sigmoid(y) = 1 / (1 + exp(-y)); exp and reciprocal both run on the EUP slot.
    o_ref[...] = pl.reciprocal(1.0 + jnp.exp(-y), approx=False).astype(o_ref.dtype)


def _vmem_bytes_estimate(tb, F, H):
    """Rough in-flight VMEM footprint of one grid step (bytes)."""
    lanes_f = 128 * pl.cdiv(F, 128)          # x-tile lane dim is padded to 128 in VMEM
    sub_h = 8 * pl.cdiv(H, 8)
    x_buf = 2 * tb * lanes_f * 4             # double-buffered f32 x tile
    h_tmp = 4 * sub_h * tb * 4               # ~4 live (H, TB) f32 temporaries
    o_buf = 2 * 8 * tb * 4                   # double-buffered (1, TB) f32 output
    w_res = sub_h * lanes_f * 2 + 2 * sub_h * 128 * 4   # W1 (bf16) + b1/w2 (f32)
    return x_buf + h_tmp + o_buf + w_res


@functools.partial(jax.jit, static_argnames=("tile_b",))
def digital_dnn_forward(x, w1, b1, w2, b2, *, tile_b=8192):
    """Forward pass of digitalDNN.

    x : (B, F) float32   (F == num_of_adcs)
    w1: (H, F) float32   H == 2*F   (PyTorch Linear layout: (out_features, in_features))
    b1: (H,)   float32
    w2: (1, H) float32
    b2: (1,)   float32
    returns (B, 1) float32 == sigmoid(relu(x @ w1.T + b1) @ w2.T + b2)
    """
    B, F = x.shape
    H = w1.shape[0]
    assert w1.shape == (H, F) and b1.shape == (H,)
    assert w2.shape == (1, H) and b2.shape == (1,)

    # --- Batch tile selection -------------------------------------------------
    # Lane-dense multiple of 128; large by default so each grid step's x DMA is
    # long enough to hide the ~0.35 us per-step pipeline overhead.
    tb = 128 * pl.cdiv(max(int(tile_b), 1), 128)
    # v7x: 2 TensorCores share HBM -- keep >= 2 "parallel" grid steps so both
    # stream concurrently (harmless on v5e/v6e: steps just run back-to-back).
    tb = min(tb, 128 * pl.cdiv(pl.cdiv(B, 2), 128))
    tb = max(tb, 128)
    # Clamp so the VMEM footprint fits a budget that is safe on all generations
    # (v7x has 64 MiB physical VMEM per TensorCore).
    vmem_budget = 32 * 1024 * 1024
    while tb > 128 and _vmem_bytes_estimate(tb, F, H) > vmem_budget:
        tb -= 128

    num_tiles = pl.cdiv(B, tb)
    bp = num_tiles * tb          # padded batch for the OUTPUT only; x is not padded

    est = _vmem_bytes_estimate(tb, F, H)
    # v5e's default scoped-VMEM limit (~16 MiB) is smaller than v6e/v7x; raise it
    # explicitly once the (budget-clamped) footprint gets close.
    vmem_limit = (int(min(est * 3 // 2, 48 * 1024 * 1024))
                  if est > 12 * 1024 * 1024 else None)

    # --- Tiny one-time parameter layout plumbing --------------------------------
    w1_c = w1.astype(jnp.bfloat16)                 # (H, F)  MXU-native
    b1_c = b1.reshape(H, 1).astype(jnp.float32)    # (H, 1)
    w2_c = w2.reshape(H, 1).astype(jnp.float32)    # (H, 1)
    b2_c = b2.reshape(1, 1).astype(jnp.float32)    # (1, 1) -> SMEM scalar

    out = pl.pallas_call(
        _mlp_kernel,
        out_shape=jax.ShapeDtypeStruct((1, bp), jnp.float32),
        grid_spec=pltpu.PrefetchScalarGridSpec(
            num_scalar_prefetch=0,
            grid=(num_tiles,),
            in_specs=[
                # x streamed straight from HBM in its natural (B, F) layout; the
                # last block may read out-of-bounds rows (all ops are lane-wise
                # and those output columns are sliced off below).
                pl.BlockSpec((tb, F), lambda i: (i, 0)),
                pl.BlockSpec((H, F), lambda i: (0, 0)),              # W1 (grid-resident)
                pl.BlockSpec((H, 1), lambda i: (0, 0)),              # b1
                pl.BlockSpec((H, 1), lambda i: (0, 0)),              # W2 column
                pl.BlockSpec(memory_space=pltpu.MemorySpace.SMEM),   # b2 scalar
            ],
            out_specs=pl.BlockSpec((1, tb), lambda i: (0, i)),
        ),
        compiler_params=pltpu.CompilerParams(
            dimension_semantics=("parallel",),
            vmem_limit_bytes=vmem_limit,
        ),
    )(x, w1_c, b1_c, w2_c, b2_c)

    # (1, bp) lane-dense row -> (B, 1); trims the padded columns of the last tile.
    return out[0, :B].reshape(B, 1)


def _init_params(key, num_of_adcs):
    """Deterministic init mimicking torch.nn.Linear default U[-1/sqrt(fan_in), +1/sqrt(fan_in)].

    Weights kept in PyTorch (out_features, in_features) layout.
    """
    k1, k2, k3, k4 = jax.random.split(key, 4)
    f_in1, f_out1 = num_of_adcs, num_of_adcs * 2
    f_in2, f_out2 = num_of_adcs * 2, 1
    bound1 = 1.0 / jnp.sqrt(jnp.float32(f_in1))
    bound2 = 1.0 / jnp.sqrt(jnp.float32(f_in2))
    w1 = jax.random.uniform(k1, (f_out1, f_in1), jnp.float32, -bound1, bound1)
    b1 = jax.random.uniform(k2, (f_out1,), jnp.float32, -bound1, bound1)
    w2 = jax.random.uniform(k3, (f_out2, f_in2), jnp.float32, -bound2, bound2)
    b2 = jax.random.uniform(k4, (f_out2,), jnp.float32, -bound2, bound2)
    return w1, b1, w2, b2


def _reference(x, w1, b1, w2, b2):
    h = jnp.maximum(x @ w1.T + b1[None, :], 0.0)
    y = h @ w2.T + b2[None, :]
    return jax.nn.sigmoid(y)


if __name__ == "__main__":
    num_of_adcs = 16   # feature dim; hidden = 32
    batch = 8

    key = jax.random.PRNGKey(0)
    kx, kp, kx2 = jax.random.split(key, 3)
    x = jax.random.normal(kx, (batch, num_of_adcs), dtype=jnp.float32)
    w1, b1, w2, b2 = _init_params(kp, num_of_adcs)

    out = digital_dnn_forward(x, w1, b1, w2, b2)
    out = jax.block_until_ready(out)
    assert out.shape == (batch, 1), out.shape

    # Against the full-f32 reference (loose tol: x/W1 stream through the MXU in bf16).
    ref = _reference(x, w1, b1, w2, b2)
    assert jnp.allclose(out, ref, atol=1e-2, rtol=1e-2), (out, ref)

    # Against a reference using the same bf16-quantized x/W1 (tight tol).
    xb = x.astype(jnp.bfloat16).astype(jnp.float32)
    w1b = w1.astype(jnp.bfloat16).astype(jnp.float32)
    ref_bf16 = _reference(xb, w1b, b1, w2, b2)
    assert jnp.allclose(out, ref_bf16, atol=2e-3, rtol=2e-3), (out, ref_bf16)

    # A second, non-tile-aligned batch exercises the partial (OOB-read) last tile
    # on the un-padded x path and the >=2-step parallel grid.
    batch2 = 300
    x2 = jax.random.normal(kx2, (batch2, num_of_adcs), dtype=jnp.float32)
    out2 = jax.block_until_ready(digital_dnn_forward(x2, w1, b1, w2, b2))
    assert out2.shape == (batch2, 1), out2.shape
    ref2 = _reference(x2, w1, b1, w2, b2)
    assert jnp.allclose(out2, ref2, atol=1e-2, rtol=1e-2), (out2, ref2)

    print("KERNEL_OK")
</pallas_src>

<mosaic_0001>
module attributes {stable_mosaic.version = 11 : i64} {
  func.func @_mlp_kernel(%arg0: i32, %arg1: memref<128x16xf32, #tpu.memory_space<vmem>>, %arg2: memref<32x16xbf16, #tpu.memory_space<vmem>>, %arg3: memref<32x1xf32, #tpu.memory_space<vmem>>, %arg4: memref<32x1xf32, #tpu.memory_space<vmem>>, %arg5: memref<1x1xf32, #tpu.memory_space<smem>>, %arg6: memref<1x128xf32, #tpu.memory_space<vmem>>) attributes {dimension_semantics = [#tpu.dimension_semantics<parallel>], iteration_bounds = array<i64: 1>, scalar_prefetch = 0 : i64, scratch_operands = 0 : i64, tpu.core_type = #tpu.core_type<tc>, window_params = [{transform_indices = @transform_0, window_bounds = array<i64: 128, 16>}, {pipeline_mode = #tpu.pipeline_mode<synchronous>, transform_indices = @transform_1, window_bounds = array<i64: 32, 16>}, {pipeline_mode = #tpu.pipeline_mode<synchronous>, transform_indices = @transform_2, window_bounds = array<i64: 32, 1>}, {pipeline_mode = #tpu.pipeline_mode<synchronous>, transform_indices = @transform_3, window_bounds = array<i64: 32, 1>}, {transform_indices = @transform_4, window_bounds = array<i64: 1, 1>}, {transform_indices = @transform_5, window_bounds = array<i64: 1, 128>}]} {
    %c0 = arith.constant 0 : index
    %c0_0 = arith.constant 0 : index
    %0 = vector.load %arg1[%c0, %c0_0] : memref<128x16xf32, #tpu.memory_space<vmem>>, vector<128x16xf32>
    %1 = arith.truncf %0 : vector<128x16xf32> to vector<128x16xbf16>
    %c0_1 = arith.constant 0 : index
    %c0_2 = arith.constant 0 : index
    %2 = vector.load %arg2[%c0_1, %c0_2] : memref<32x16xbf16, #tpu.memory_space<vmem>>, vector<32x16xbf16>
    %3 = tpu.transpose %1, [1, 0] : vector<128x16xbf16> -> vector<16x128xbf16>
    %cst = arith.constant dense<0.000000e+00> : vector<32x128xf32>
    %4 = tpu.matmul %2, %3, %cst {dimension_numbers = #tpu.dot_dimension_numbers<[1], [0], [0], [1], [0, 0, 1, 1], [], []>} : vector<32x16xbf16>, vector<16x128xbf16>, vector<32x128xf32> -> vector<32x128xf32>
    %c0_3 = arith.constant 0 : index
    %c0_4 = arith.constant 0 : index
    %5 = vector.load %arg3[%c0_3, %c0_4] : memref<32x1xf32, #tpu.memory_space<vmem>>, vector<32x1xf32>
    %6 = vector.broadcast %5 : vector<32x1xf32> to vector<32x128xf32>
    %7 = arith.addf %4, %6 : vector<32x128xf32>
    %cst_5 = arith.constant 0.000000e+00 : f32
    %8 = vector.broadcast %cst_5 : f32 to vector<32x128xf32>
    %9 = arith.maximumf %7, %8 : vector<32x128xf32>
    %c0_6 = arith.constant 0 : index
    %c0_7 = arith.constant 0 : index
    %10 = vector.load %arg4[%c0_6, %c0_7] : memref<32x1xf32, #tpu.memory_space<vmem>>, vector<32x1xf32>
    %11 = vector.broadcast %10 : vector<32x1xf32> to vector<32x128xf32>
    %12 = arith.mulf %9, %11 : vector<32x128xf32>
    %cst_8 = arith.constant dense<0.000000e+00> : vector<128xf32>
    %13 = vector.multi_reduction <add>, %12, %cst_8 [0] : vector<32x128xf32> to vector<128xf32>
    %14 = vector.shape_cast %13 : vector<128xf32> to vector<1x128xf32>
    %c0_9 = arith.constant 0 : index
    %c0_10 = arith.constant 0 : index
    %15 = memref.load %arg5[%c0_9, %c0_10] : memref<1x1xf32, #tpu.memory_space<smem>>
    %16 = vector.broadcast %15 : f32 to vector<1x128xf32>
    %17 = arith.addf %14, %16 : vector<1x128xf32>
    %cst_11 = arith.constant 0.000000e+00 : f32
    %18 = vector.broadcast %cst_11 : f32 to vector<1x128xf32>
    %19 = arith.subf %18, %17 : vector<1x128xf32>
    %20 = math.exp %19 : vector<1x128xf32>
    %cst_12 = arith.constant 1.000000e+00 : f32
    %21 = vector.broadcast %cst_12 : f32 to vector<1x128xf32>
    %22 = arith.addf %21, %20 : vector<1x128xf32>
    %23 = tpu.reciprocal %22 : vector<1x128xf32> -> vector<1x128xf32>
    %c0_13 = arith.constant 0 : index
    %c0_14 = arith.constant 0 : index
    %24 = vector.load %arg6[%c0_13, %c0_14] : memref<1x128xf32, #tpu.memory_space<vmem>>, vector<1x128xf32>
    tpu.vector_store %arg6[%c0_13, %c0_14], %23 {strides = array<i32>} : memref<1x128xf32, #tpu.memory_space<vmem>>, vector<1x128xf32>,
    return
  }
  func.func @transform_0(%arg0: i32) -> (i32, i32) {
    %c0_i32 = arith.constant 0 : i32
    %c0_i32_0 = arith.constant 0 : i32
    return %arg0, %c0_i32 : i32, i32
  }
  func.func @transform_1(%arg0: i32) -> (i32, i32) {
    %c0_i32 = arith.constant 0 : i32
    %c0_i32_0 = arith.constant 0 : i32
    %c0_i32_1 = arith.constant 0 : i32
    return %c0_i32, %c0_i32_0 : i32, i32
  }
  func.func @transform_2(%arg0: i32) -> (i32, i32) {
    %c0_i32 = arith.constant 0 : i32
    %c0_i32_0 = arith.constant 0 : i32
    %c0_i32_1 = arith.constant 0 : i32
    return %c0_i32, %c0_i32_0 : i32, i32
  }
  func.func @transform_3(%arg0: i32) -> (i32, i32) {
    %c0_i32 = arith.constant 0 : i32
    %c0_i32_0 = arith.constant 0 : i32
    %c0_i32_1 = arith.constant 0 : i32
    return %c0_i32, %c0_i32_0 : i32, i32
  }
  func.func @transform_4(%arg0: i32) -> (i32, i32) {
    %c0_i32 = arith.constant 0 : i32
    %c0_i32_0 = arith.constant 0 : i32
    %c0_i32_1 = arith.constant 0 : i32
    return %c0_i32, %c0_i32_0 : i32, i32
  }
  func.func @transform_5(%arg0: i32) -> (i32, i32) {
    %c0_i32 = arith.constant 0 : i32
    %c0_i32_0 = arith.constant 0 : i32
    return %c0_i32, %arg0 : i32, i32
  }
}

</mosaic_0001>

<bundles_post_ra>
// kernel: digital_dnn_forward.1
= control target key start
LH: loop header
LB: loop body
LE: loop exit
PB: predicated region body
PF: predicated region fallthrough
CT: control target
= control target key end

     0   :  { %vm84_vm0 = vcmask 130048   ;;  %v269_v3 = vmov 0   ;;  %s402_s0 = inlined_call_operand.vmem [shape: f32[8,16], index: 0, kind: input, shape index: {}]   ;;  %s403_s1 = inlined_call_operand.vmem [shape: bf16[32,16], index: 1, kind: input, shape index: {}]   ;;  %s404_s2 = inlined_call_operand.vmem [shape: f32[32,1], index: 2, kind: input, shape index: {}]   ;;  %s405_s3 = inlined_call_operand.vmem [shape: f32[32,1], index: 3, kind: input, shape index: {}]   ;;  %s406_s4 = inlined_call_operand.<no memory space> [shape: f32[1,1], index: 4, kind: input, shape index: {}]   ;;  %s407_s5 = inlined_call_operand.vmem [shape: f32[1,128], index: 5, kind: output, shape index: {}]  }
   0x1   :  { %v22_v0 = vld [vmem:[%s402_s0] sm:$0xff]  ;;  %v23_v1 = vld [vmem:[%s402_s0 + $0x8] sm:$0xff]  ;;  %v24_v2 = vld [vmem:[%s402_s0 + $0x10] sm:$0xff]  ;;  %261 = vset.pattern.permute.xlu0 %v269_v3  ;;  %262 = vset.pattern.permute.xlu1 %v269_v3 }
   0x2   :  { %v38_v4 = vpack.c.bf16 %v23_v1, %v22_v0  ;;  %v25_v5 = vld [vmem:[%s402_s0 + $0x18] sm:$0xff]  ;;  %v26_v8 = vld [vmem:[%s402_s0 + $0x20] sm:$0xff]  ;;  %v27_v9 = vld [vmem:[%s402_s0 + $0x28] sm:$0xff] }
   0x3   :  { %v39_v6 = vpack.c.bf16 %v25_v5, %v24_v2  ;;  %v263_v10 = vld [vmem:[%s403_s1] sm:$0xff]   ;;  %v52_v12 = vld [vmem:[%s404_s2 + $0x10] sm:$0xff]  ;;  %v40_v14 = vpack.c.bf16 %v27_v9, %v26_v8  ;;  %v51_v15 = vld [vmem:[%s404_s2 + $0x8] sm:$0xff] }
   0x4   :  { %252 = vmatprep.subr.msk.bf16.mxu0 %vm84_vm0, %v38_v4  ;;  %v92_v7 = vsel %vm84_vm0, %v38_v4, 0  ;;  %v50_v11 = vld [vmem:[%s404_s2] sm:$0xff]  ;;  %248 = vmatprep.mubr.msk.bf16.mxu0 %vm84_vm0, %v263_v10  ;;  %v53_v16 = vld [vmem:[%s404_s2 + $0x18] sm:$0xff]  ;;  %v28_v18 = vld [vmem:[%s402_s0 + $0x30] sm:$0xff] }
   0x5   :  { %233 = vmatpush3.bf16.xpose.msra.mxu0 %v92_v7  ;;  %56 = vperm.xlu0 %261, %v50_v11   ;;  %v95_v13 = vsel %vm84_vm0, %v39_v6, 0  ;;  %v168_v17 = vld [vmem:[%s405_s3] sm:$0xff]  ;;  %v29_v19 = vld [vmem:[%s402_s0 + $0x38] sm:$0xff]  ;;  %v169_v20 = vld [vmem:[%s405_s3 + $0x8] sm:$0xff]  ;;  %v98_v21 = vsel %vm84_vm0, %v40_v14, 0  ;;  %v206_v11 = vstv %s406_s4 }
   0x6   :  { %253 = vmatprep.subr.msk.bf16.mxu0 %vm84_vm0, %v39_v6  ;;  %66 = vperm.xlu1 %262, %v52_v12   ;;  %v41_v22 = vpack.c.bf16 %v29_v19, %v28_v18  ;;  %v170_v23 = vld [vmem:[%s405_s3 + $0x10] sm:$0xff]  ;;  %v171_v24 = vld [vmem:[%s405_s3 + $0x18] sm:$0xff]  ;;  %v30_v25 = vld [vmem:[%s402_s0 + $0x40] sm:$0xff] }
   0x7   :  { %v31_v26 = vld [vmem:[%s402_s0 + $0x48] sm:$0xff]  ;;  %v32_v29 = vld [vmem:[%s402_s0 + $0x50] sm:$0xff]  ;;  %v33_v30 = vld [vmem:[%s402_s0 + $0x58] sm:$0xff] }
   0x8   :  { %v101_v27 = vsel %vm84_vm0, %v41_v22, 0  ;;  %v42_v28 = vpack.c.bf16 %v31_v26, %v30_v25  ;;  %v43_v32 = vpack.c.bf16 %v33_v30, %v32_v29  ;;  %v34_v33 = vld [vmem:[%s402_s0 + $0x60] sm:$0xff]  ;;  %v35_v34 = vld [vmem:[%s402_s0 + $0x68] sm:$0xff]  ;;  %v36_v37 = vld [vmem:[%s402_s0 + $0x70] sm:$0xff] }
   0x9   :  { %61 = vperm.xlu0 %261, %v51_v15   ;;  %v44_v36 = vpack.c.bf16 %v35_v34, %v34_v33  ;;  %v37_v38 = vld [vmem:[%s402_s0 + $0x78] sm:$0xff]  ;;  %v264_v42 = vld [vmem:[%s403_s1 + $0x8] sm:$0xff]  }
   0xa   :  { %71 = vperm.xlu1 %262, %v53_v16   ;;  %v104_v31 = vsel %vm84_vm0, %v42_v28, 0  ;;  %v107_v35 = vsel %vm84_vm0, %v43_v32, 0  ;;  %v45_v40 = vpack.c.bf16 %v37_v38, %v36_v37 }
   0xb   :  { %v110_v39 = vsel %vm84_vm0, %v44_v36, 0 }
   0xc   :  { %v113_v41 = vsel %vm84_vm0, %v45_v40, 0 }
   0xd   :  { %235 = vmatpush3.bf16.xpose.msra.mxu0 %v95_v13  ;;  %174 = vperm.xlu0 %261, %v168_v17  }
   0xe   :  { %254 = vmatprep.subr.msk.bf16.mxu0 %vm84_vm0, %v40_v14  ;;  %179 = vperm.xlu1 %262, %v169_v20  }
  0x11   :  { %184 = vperm.xlu0 %261, %v170_v23  }
  0x12   :  { %189 = vperm.xlu1 %262, %v171_v24  }
  0x15   :  { %237 = vmatpush3.bf16.xpose.msra.mxu0 %v98_v21 }
  0x16   :  { %255 = vmatprep.subr.msk.bf16.mxu0 %vm84_vm0, %v41_v22 }
  0x1d   :  { %239 = vmatpush3.bf16.xpose.msra.mxu0 %v101_v27 }
  0x1e   :  { %256 = vmatprep.subr.msk.bf16.mxu0 %vm84_vm0, %v42_v28 }
  0x25   :  { %241 = vmatpush3.bf16.xpose.msra.mxu0 %v104_v31 }
  0x26   :  { %257 = vmatprep.subr.msk.bf16.mxu0 %vm84_vm0, %v43_v32 }
  0x2d   :  { %243 = vmatpush3.bf16.xpose.msra.mxu0 %v107_v35 }
  0x2e   :  { %258 = vmatprep.subr.msk.bf16.mxu0 %vm84_vm0, %v44_v36 }
  0x35   :  { %245 = vmatpush3.bf16.xpose.msra.mxu0 %v110_v39 }
  0x36   :  { %259 = vmatprep.subr.msk.bf16.mxu0 %vm84_vm0, %v45_v40 }
  0x3d   :  { %247 = vmatpush3.bf16.xpose.msra.mxu0 %v113_v41 }
  0x44   :  { %249 = vmatmul.mubr.msk.bf16.vlgmr.msra.gmra.mrb[0].mxu0 %vm84_vm0, %v264_v42 }
  0x84   :  { %v57_v43 = vpop.permute.xlu0 %56 }
  0x85   :  { %v67_v44 = vpop.permute.xlu1 %66 }
  0x88   :  { %v62_v45 = vpop.permute.xlu0 %61 }
  0x89   :  { %v72_v46 = vpop.permute.xlu1 %71 }
  0x8c   :  { %v175_v52 = vpop.permute.xlu0 %174 }
  0x8d   :  { %v180_v57 = vpop.permute.xlu1 %179 }
  0x90   :  { %v185_v63 = vpop.permute.xlu0 %184 }
  0x91   :  { %v190_v2 = vpop.permute.xlu1 %189 }
 0x117   :  { %v250_v47 = vpop.f32.mrb[0].mxu0 }
 0x118   :  { %v149_v48 = vpop.f32.mrb[1].mxu0  ;;  %v158_v49 = vadd.f32 %v250_v47, %v67_v44 }
 0x119   :  { %v150_v50 = vadd.f32 %v149_v48, %v57_v43  ;;  %v251_v51 = vpop.f32.mrb[2].mxu0 }
 0x11a   :  { %v152_v53 = vpop.f32.mrb[3].mxu0  ;;  %v161_v55 = vadd.f32 %v251_v51, %v72_v46  ;;  %v166_v58 = vmax.f32 %v158_v49, 0.0 }
 0x11b   :  { %v164_v54 = vmax.f32 %v150_v50, 0.0  ;;  %v153_v56 = vadd.f32 %v152_v53, %v62_v45 }
 0x11c   :  { %v167_v61 = vmax.f32 %v161_v55, 0.0  ;;  %v194_v0 = vmul.f32 %v185_v63, %v166_v58 }
 0x11d   :  { %v165_v59 = vmax.f32 %v153_v56, 0.0  ;;  %v192_v60 = vmul.f32 %v175_v52, %v164_v54 }
 0x11e   :  { %v195_v3 = vmul.f32 %v190_v2, %v167_v61 }
 0x11f   :  { %v193_v62 = vmul.f32 %v180_v57, %v165_v59 }
 0x121   :  { %v196_v1 = vadd.f32 %v193_v62, %v192_v60 }
 0x123   :  { %v197_v4 = vadd.f32 %v196_v1, %v194_v0 }
 0x125   :  { %v198_v5 = vadd.f32 %v197_v4, %v195_v3 }
 0x127   :  { %v199_v6 = vrot.slane %v198_v5, 4 }
 0x129   :  { %v200_v7 = vadd.f32 %v199_v6, %v198_v5 }
 0x12b   :  { %v201_v8 = vrot.slane %v200_v7, 2 }
 0x12d   :  { %v202_v9 = vadd.f32 %v201_v8, %v200_v7 }
 0x12f   :  { %v203_v10 = vrot.slane %v202_v9, 1 }
 0x131   :  { %v204_v12 = vadd.f32 %v203_v10, %v202_v9 }
 0x133   :  { %v207_v13 = vadd.f32 %v206_v11, %v204_v12 }
 0x135   :  { %v208_v14 = vsub.f32 0.0, %v207_v13 }
 0x137   :  { %v209_v15 = vmul.f32 1.442695, %v208_v14 }
 0x139   :  { %265 = vpow2.f32 %v209_v15 }
 0x143   :  { %v266_v16 = vpop.eup %265 }
 0x144   :  { %v211_v17 = vadd.f32 1.0, %v266_v16 }
 0x146   :  { %267 = vrcp.f32 %v211_v17 }
 0x150   :  { %v268_v18 = vpop.eup %267 }
 0x151   :  { %213 = vst [vmem:[%s407_s5] sm:$0x1] %v268_v18 }

</bundles_post_ra>
